<compile_context>
chip_gen: v5e
topology: v5e:2x2
jax: 0.10.0
libtpu: 0.0.40
codegen_flags: <defaults>
</compile_context>

<pallas_src>
import jax
import jax.numpy as jnp
from jax.experimental import pallas as pl
from jax.experimental.pallas import tpu as pltpu

OUT_PAD = 128            # lane-dense padded logit width; true out_features sliced by caller.
UNGRIDDED_MAX_ROWS = 6144  # single-shot VMEM budget threshold (see accounting above).


def _classifier_kernel(x_ref, w0_ref, b0_ref, w1_ref, b1_ref, o_ref):
    # x: (tile, F).  BN0/BN1 already folded into w0/b0/w1/b1.
    x = x_ref[...]
    # Accept bf16 activations straight from the producer; only cast if f32.
    xb = x if x.dtype == jnp.bfloat16 else x.astype(jnp.bfloat16)

    # fc0 (+ folded BN0) + ReLU : bf16 MXU matmul, f32 accumulation / f32 epilogue.
    h = jnp.dot(xb, w0_ref[...], preferred_element_type=jnp.float32) + b0_ref[...]
    h = jnp.maximum(h, 0.0)

    # fc1 (+ folded BN1) : kept in f32 (w1 is tiny) for logit-margin precision.
    out = jnp.dot(h, w1_ref[...], preferred_element_type=jnp.float32) + b1_ref[...]
    o_ref[...] = out.astype(o_ref.dtype)


def custom_classifier_forward(x, params, out_features=10, *,
                              out_dtype=jnp.float32, return_padded=False,
                              batch_tile=1024, force_grid=False):
    """x: (B, in_features) f32 or bf16.  params: folded/padded kernel params."""
    B, F = x.shape
    H = params["w0"].shape[1]

    inputs = (x, params["w0"], params["b0"], params["w1"], params["b1"])
    weight_bytes = sum(int(p.size) * p.dtype.itemsize for p in inputs[1:])
    flops = 2 * B * (F * H + H * OUT_PAD)
    bytes_accessed = int(x.size * x.dtype.itemsize + weight_bytes
                         + B * OUT_PAD * jnp.dtype(out_dtype).itemsize)
    cost = pl.CostEstimate(flops=flops, transcendentals=0,
                           bytes_accessed=bytes_accessed)

    use_grid = force_grid or B > UNGRIDDED_MAX_ROWS

    if not use_grid:
        # Small/medium batch: single un-gridded call, everything VMEM-resident.
        # Avoids ~0.35 us/step grid overhead; strictly fastest below the threshold.
        vmem = pl.BlockSpec(memory_space=pltpu.MemorySpace.VMEM)
        out_padded = pl.pallas_call(
            _classifier_kernel,
            out_shape=jax.ShapeDtypeStruct((B, OUT_PAD), out_dtype),
            in_specs=[vmem] * len(inputs),
            out_specs=vmem,
            cost_estimate=cost,
        )(*inputs)
    else:
        # Large batch: 1-D batch grid.  Weights use constant index_maps so they are
        # DMA'd once and stay VMEM-resident; x/out stream in >=512-row tiles.
        tile = max(8, min(batch_tile, B))
        tile -= tile % 8  # second-to-last block dim must be a multiple of 8
        grid_spec = pltpu.PrefetchScalarGridSpec(
            num_scalar_prefetch=0,
            grid=(pl.cdiv(B, tile),),
            in_specs=[
                pl.BlockSpec((tile, F), lambda i: (i, 0)),       # x: streamed per step
                pl.BlockSpec((F, H), lambda i: (0, 0)),          # w0: VMEM-resident
                pl.BlockSpec((1, H), lambda i: (0, 0)),          # b0: VMEM-resident
                pl.BlockSpec((H, OUT_PAD), lambda i: (0, 0)),    # w1: VMEM-resident
                pl.BlockSpec((1, OUT_PAD), lambda i: (0, 0)),    # b1: VMEM-resident
            ],
            out_specs=pl.BlockSpec((tile, OUT_PAD), lambda i: (i, 0)),
        )
        out_padded = pl.pallas_call(
            _classifier_kernel,
            out_shape=jax.ShapeDtypeStruct((B, OUT_PAD), out_dtype),
            grid_spec=grid_spec,
            # "parallel": v7x megacore shards the batch axis across its 2 TCs;
            # no-op on single-TC v5e/v6e.
            compiler_params=pltpu.CompilerParams(
                dimension_semantics=("parallel",)),
            cost_estimate=cost,
        )(*inputs)

    if return_padded:
        # Consumer takes the [B, 128] slab directly (argmax/mask the first
        # out_features columns) -- skips an extra XLA slice that re-reads and
        # re-writes the whole output.
        return out_padded
    return out_padded[:, :out_features]


def make_params(key, in_features, intermed_bn=512, out_features=10):
    """Deterministic params matching CustomClassifier's shapes.

    Returns (kernel_params, ref_params):
      kernel_params: eval-mode BN folded into the Linears; w0 in bf16
                     (weight-streaming), w1/biases in f32; fc1 zero-padded to
                     OUT_PAD output columns.
      ref_params:    unfolded f32 params for the pure-JAX reference.
    """
    ks = jax.random.split(key, 10)
    eps = 1e-5

    # --- fc_bn0: BatchNorm1d(in_features), eval mode (running stats) ---
    gamma0 = jax.random.normal(ks[0], (in_features,), jnp.float32) * 0.1 + 1.0
    beta0 = jax.random.normal(ks[1], (in_features,), jnp.float32) * 0.1
    rmean0 = jax.random.normal(ks[2], (in_features,), jnp.float32) * 0.1
    rvar0 = jnp.abs(jax.random.normal(ks[3], (in_features,), jnp.float32) * 0.1) + 1.0
    scale0 = gamma0 / jnp.sqrt(rvar0 + eps)
    shift0 = beta0 - rmean0 * scale0

    # --- fc0: Linear(in_features, intermed_bn) ---
    w0 = jax.random.normal(ks[4], (in_features, intermed_bn), jnp.float32) * 0.02
    b0 = jax.random.normal(ks[5], (intermed_bn,), jnp.float32) * 0.02

    # --- fc_bn1: BatchNorm1d(intermed_bn), eval mode ---
    gamma1 = jax.random.normal(ks[6], (intermed_bn,), jnp.float32) * 0.1 + 1.0
    beta1 = jax.random.normal(ks[7], (intermed_bn,), jnp.float32) * 0.1
    rmean1 = jnp.zeros((intermed_bn,), jnp.float32)
    rvar1 = jnp.ones((intermed_bn,), jnp.float32)
    scale1 = gamma1 / jnp.sqrt(rvar1 + eps)
    shift1 = beta1 - rmean1 * scale1

    # --- fc1: Linear(intermed_bn, out_features) ---
    w1 = jax.random.normal(ks[8], (intermed_bn, out_features), jnp.float32) * 0.02
    b1 = jax.random.normal(ks[9], (out_features,), jnp.float32) * 0.02

    # ---- Fold BN (which precedes each Linear in the module) into the Linears ----
    w0_f = scale0[:, None] * w0                       # (F, H)
    b0_f = shift0 @ w0 + b0                           # (H,)
    w1_f = scale1[:, None] * w1                       # (H, O)
    b1_f = shift1 @ w1 + b1                           # (O,)

    # ---- Pad fc1 output dim to OUT_PAD lanes (unmasked lane-dense stores) ----
    w1_p = jnp.zeros((intermed_bn, OUT_PAD), jnp.float32).at[:, :out_features].set(w1_f)
    b1_p = jnp.zeros((OUT_PAD,), jnp.float32).at[:out_features].set(b1_f)

    kernel_params = {
        "w0": w0_f.astype(jnp.bfloat16),              # bf16 weight streaming (dominant bytes)
        "b0": b0_f.reshape(1, intermed_bn),           # f32 bias (lane row)
        "w1": w1_p,                                   # f32 kept for logit precision (tiny)
        "b1": b1_p.reshape(1, OUT_PAD),
    }
    ref_params = {
        "scale0": scale0.reshape(1, in_features),
        "shift0": shift0.reshape(1, in_features),
        "w0": w0, "b0": b0.reshape(1, intermed_bn),
        "scale1": scale1.reshape(1, intermed_bn),
        "shift1": shift1.reshape(1, intermed_bn),
        "w1": w1, "b1": b1.reshape(1, out_features),
    }
    return kernel_params, ref_params


def reference_forward(x, p):
    """Pure-JAX f32 reference matching the PyTorch module in eval mode."""
    h = x * p["scale0"] + p["shift0"]
    h = jnp.maximum(h @ p["w0"] + p["b0"], 0.0)
    h = h * p["scale1"] + p["shift1"]
    return h @ p["w1"] + p["b1"]


if __name__ == "__main__":
    batch, in_features, intermed_bn, out_features = 8, 256, 512, 10

    key = jax.random.PRNGKey(0)
    kx, kp, kb = jax.random.split(key, 3)
    kernel_params, ref_params = make_params(kp, in_features, intermed_bn, out_features)

    # 1) Small-batch serving shape (B=8): single un-gridded, everything-in-VMEM call.
    x_small = jax.random.normal(kx, (batch, in_features), jnp.float32)
    out_small = custom_classifier_forward(x_small, kernel_params, out_features)
    out_small = jax.block_until_ready(out_small)
    ref_small = reference_forward(x_small, ref_params)
    assert out_small.shape == (batch, out_features)
    assert jnp.allclose(out_small, ref_small, atol=2e-2, rtol=2e-2), \
        float(jnp.max(jnp.abs(out_small - ref_small)))

    # 2) Batched-serving regime (B=1024): bf16 activations as-if emitted by the
    #    producer (cast once at construction here -- in production change the
    #    producer dtype, do not add a per-call cast), bf16 padded output, 1-D
    #    batch grid with VMEM-resident weights and 512-row tiles.
    big_batch = 1024
    x_big_f32 = jax.random.normal(kb, (big_batch, in_features), jnp.float32)
    x_big_bf16 = x_big_f32.astype(jnp.bfloat16)
    out_big_padded = custom_classifier_forward(
        x_big_bf16, kernel_params, out_features,
        out_dtype=jnp.bfloat16, return_padded=True,
        batch_tile=512, force_grid=True)
    out_big_padded = jax.block_until_ready(out_big_padded)
    assert out_big_padded.shape == (big_batch, OUT_PAD)
    ref_big = reference_forward(x_big_f32, ref_params)
    out_big = out_big_padded[:, :out_features].astype(jnp.float32)
    # bf16 x + bf16 w0 + bf16 output store vs f32 reference -> looser tolerance.
    assert jnp.allclose(out_big, ref_big, atol=6e-2, rtol=6e-2), \
        float(jnp.max(jnp.abs(out_big - ref_big)))

    print("KERNEL_OK")
</pallas_src>

<mosaic_0001>
module attributes {stable_mosaic.version = 11 : i64} {
  func.func @_classifier_kernel(%arg0: memref<8x256xf32, #tpu.memory_space<vmem>>, %arg1: memref<256x512xbf16, #tpu.memory_space<vmem>>, %arg2: memref<1x512xf32, #tpu.memory_space<vmem>>, %arg3: memref<512x128xf32, #tpu.memory_space<vmem>>, %arg4: memref<1x128xf32, #tpu.memory_space<vmem>>, %arg5: memref<8x128xf32, #tpu.memory_space<vmem>>) attributes {dimension_semantics = [], scalar_prefetch = 0 : i64, scratch_operands = 0 : i64, tpu.core_type = #tpu.core_type<tc>} {
    %c0 = arith.constant 0 : index
    %c0_0 = arith.constant 0 : index
    %0 = vector.load %arg0[%c0, %c0_0] : memref<8x256xf32, #tpu.memory_space<vmem>>, vector<8x256xf32>
    %1 = arith.truncf %0 : vector<8x256xf32> to vector<8x256xbf16>
    %c0_1 = arith.constant 0 : index
    %c0_2 = arith.constant 0 : index
    %2 = vector.load %arg1[%c0_1, %c0_2] : memref<256x512xbf16, #tpu.memory_space<vmem>>, vector<256x512xbf16>
    %cst = arith.constant dense<0.000000e+00> : vector<8x512xf32>
    %3 = tpu.matmul %1, %2, %cst {dimension_numbers = #tpu.dot_dimension_numbers<[1], [0], [0], [1], [0, 0, 1, 1], [], []>} : vector<8x256xbf16>, vector<256x512xbf16>, vector<8x512xf32> -> vector<8x512xf32>
    %c0_3 = arith.constant 0 : index
    %c0_4 = arith.constant 0 : index
    %4 = vector.load %arg2[%c0_3, %c0_4] : memref<1x512xf32, #tpu.memory_space<vmem>>, vector<1x512xf32>
    %5 = vector.broadcast %4 : vector<1x512xf32> to vector<8x512xf32>
    %6 = arith.addf %3, %5 : vector<8x512xf32>
    %cst_5 = arith.constant 0.000000e+00 : f32
    %7 = vector.broadcast %cst_5 : f32 to vector<8x512xf32>
    %8 = arith.maximumf %6, %7 : vector<8x512xf32>
    %c0_6 = arith.constant 0 : index
    %c0_7 = arith.constant 0 : index
    %9 = vector.load %arg3[%c0_6, %c0_7] : memref<512x128xf32, #tpu.memory_space<vmem>>, vector<512x128xf32>
    %cst_8 = arith.constant dense<0.000000e+00> : vector<8x128xf32>
    %10 = tpu.matmul %8, %9, %cst_8 {dimension_numbers = #tpu.dot_dimension_numbers<[1], [0], [0], [1], [0, 0, 1, 1], [], []>} : vector<8x512xf32>, vector<512x128xf32>, vector<8x128xf32> -> vector<8x128xf32>
    %c0_9 = arith.constant 0 : index
    %c0_10 = arith.constant 0 : index
    %11 = vector.load %arg4[%c0_9, %c0_10] : memref<1x128xf32, #tpu.memory_space<vmem>>, vector<1x128xf32>
    %12 = vector.broadcast %11 : vector<1x128xf32> to vector<8x128xf32>
    %13 = arith.addf %10, %12 : vector<8x128xf32>
    %c0_11 = arith.constant 0 : index
    %c0_12 = arith.constant 0 : index
    %14 = vector.load %arg5[%c0_11, %c0_12] : memref<8x128xf32, #tpu.memory_space<vmem>>, vector<8x128xf32>
    tpu.vector_store %arg5[%c0_11, %c0_12], %13 {strides = array<i32>} : memref<8x128xf32, #tpu.memory_space<vmem>>, vector<8x128xf32>,
    return
  }
}

</mosaic_0001>

<bundles_post_ra>
// kernel: tpu_custom_call.1
= control target key start
LH: loop header
LB: loop body
LE: loop exit
PB: predicated region body
PF: predicated region fallthrough
CT: control target
= control target key end

     0   :  { %10 = vsyncpa [#allocation3], 0  ;;  %s1281_s0 = inlined_call_operand.hbm [shape: f32[8,256], index: 0, kind: input, shape index: {}]   ;;  %s1282_s1 = inlined_call_operand.hbm [shape: bf16[256,512], index: 1, kind: input, shape index: {}]   ;;  %s1283_s2 = inlined_call_operand.hbm [shape: f32[1,512], index: 2, kind: input, shape index: {}]   ;;  %s1284_s3 = inlined_call_operand.hbm [shape: f32[512,128], index: 3, kind: input, shape index: {}]   ;;  %s1285_s4 = inlined_call_operand.vmem [shape: f32[1,128], index: 4, kind: input, shape index: {}]   ;;  %s1286_s5 = inlined_call_operand.hbm [shape: f32[8,128], index: 5, kind: output, shape index: {}]  }
   0x1   :  { %11 = vsyncpa [#allocation6], 0 }
   0x2   :  { %12 = vsyncpa [#allocation9], 0  ;;  %s29_s20 = sshll.u32 %s1282_s1, 4  ;;  %s30_s20 = int_to_ptr.hbm [resolvable:$true] %s29_s20 }
   0x3   :  { %13 = vsyncpa [#allocation4], 0  ;;  %s1212_s21 = smov [#allocation5]   ;;  %s19_s25 = sshll.u32 %s1281_s0, 4  ;;  %s20_s25 = int_to_ptr.hbm [resolvable:$true] %s19_s25 }
   0x4   :  { %s31_s22 = sshll.u32 %s1212_s21, 4  ;;  %s1213_s26 = smov 256   ;;  %s32_s22 = int_to_ptr.vmem [resolvable:$true] %s31_s22 }
   0x5   :  { %s1214_s27 = smov 16   ;;  %s1215_s28 = smov [#allocation2]  }
   0x6   :  { %37 = dma.hbm_to_vmem [thread:$0]  %s30_s20, 8192, %s32_s22, [#allocation6], %s1213_s26, %s1213_s26, %s1214_s27  }
   0x7   :  { %s21_s29 = sshll.u32 %s1215_s28, 4  ;;  %s43_s7 = sshll.u32 %s1283_s2, 4  ;;  %s22_s29 = int_to_ptr.vmem [resolvable:$true] %s21_s29  ;;  %s44_s7 = int_to_ptr.hbm [resolvable:$true] %s43_s7 }
   0x8   :  { %24 = dma.hbm_to_vmem [thread:$0]  %s20_s25, 256, %s22_s29, [#allocation3]  }
   0x9   :  { %s53_s9 = sshll.u32 %s1284_s3, 4  ;;  %s1216_s10 = smov [#allocation7]   ;;  %s54_s9 = int_to_ptr.hbm [resolvable:$true] %s53_s9 }
   0xa   :  { %s45_s11 = sshll.u32 %s1216_s10, 4  ;;  %s1217_s0 = smov [#allocation8]   ;;  %s46_s11 = int_to_ptr.vmem [resolvable:$true] %s45_s11 }
   0xb   :  { %48 = dma.hbm_to_vmem [thread:$0]  %s44_s7, 64, %s46_s11, [#allocation6]  }
   0xc   :  { %s55_s12 = sshll.u32 %s1217_s0, 4  ;;  %s1218_s13 = smov 128   ;;  %s56_s12 = int_to_ptr.vmem [resolvable:$true] %s55_s12 }
   0xd   :  { %s1219_s14 = smov 8  }
   0xe   :  { %61 = dma.hbm_to_vmem [thread:$0]  %s54_s9, 8192, %s56_s12, [#allocation9], %s1218_s13, %s1218_s13, %s1219_s14  }
   0xf   :  { %1204 = dma.done.wait [#allocation3], 256  }
  0x10   :  { %1205 = vsyncadd [#allocation3], 4294967040 }
  0x11   :  { %1206 = dma.done.wait [#allocation6], 8256  }
  0x12   :  { %1207 = vsyncadd [#allocation6], 4294959040 }
  0x13   :  { %1208 = dma.done.wait [#allocation9], 8192  }
  0x14   :  { %1209 = vsyncadd [#allocation9], 4294959104  ;;  %v868_v0 = vld [vmem:[#allocation5 + $0xe0] sm:$0xf]  ;;  %v1040_v1 = vld [vmem:[#allocation5 + $0xec] sm:$0xf0] }
  0x15   :  { %v996_v2 = vld [vmem:[#allocation5 + $0x1e0] sm:$0xf]  ;;  %v869_v3 = vor.u32 %v1040_v1, %v868_v0  ;;  %v1072_v4 = vld [vmem:[#allocation5 + $0x1ec] sm:$0xf0]  ;;  %v1038_v5 = vld [vmem:[#allocation5 + $0xe4] sm:$0xf] }
  0x16   :  { %v870_v6 = vld [vmem:[#allocation5 + $0xf0] sm:$0xf0]  ;;  %v997_v7 = vor.u32 %v1072_v4, %v996_v2  ;;  %v1070_v9 = vld [vmem:[#allocation5 + $0x1e4] sm:$0xf]  ;;  %v852_v11 = vld [vmem:[#allocation5 + $0xc0] sm:$0xf] }
  0x17   :  { %v873_v8 = vor.u32 %v1038_v5, %v870_v6  ;;  %v998_v10 = vld [vmem:[#allocation5 + $0x1f0] sm:$0xf0]  ;;  %478 = vmatpush.bf16.msra.mxu0 %v869_v3  ;;  %v1036_v13 = vld [vmem:[#allocation5 + $0xcc] sm:$0xf0]  ;;  %v980_v14 = vld [vmem:[#allocation5 + $0x1c0] sm:$0xf] }
  0x18   :  { %v1001_v12 = vor.u32 %v1070_v9, %v998_v10  ;;  %v1068_v15 = vld [vmem:[#allocation5 + $0x1cc] sm:$0xf0]  ;;  %491 = vmatpush.bf16.msra.mxu1 %v997_v7  ;;  %v853_v16 = vor.u32 %v1036_v13, %v852_v11  ;;  %v1034_v18 = vld [vmem:[#allocation5 + $0xc4] sm:$0xf]  ;;  %v854_v19 = vld [vmem:[#allocation5 + $0xd0] sm:$0xf0] }
  0x19   :  { %504 = vmatpush.bf16.msra.mxu2 %v873_v8  ;;  %v981_v17 = vor.u32 %v1068_v15, %v980_v14  ;;  %v1066_v20 = vld [vmem:[#allocation5 + $0x1c4] sm:$0xf]  ;;  %v857_v21 = vor.u32 %v1034_v18, %v854_v19  ;;  %v982_v22 = vld [vmem:[#allocation5 + $0x1d0] sm:$0xf0]  ;;  %v836_v23 = vld [vmem:[#allocation5 + $0xa0] sm:$0xf] }
  0x1a   :  { %517 = vmatpush.bf16.msra.mxu3 %v1001_v12  ;;  %v1032_v24 = vld [vmem:[#allocation5 + $0xac] sm:$0xf0]  ;;  %v985_v25 = vor.u32 %v1066_v20, %v982_v22  ;;  %v964_v26 = vld [vmem:[#allocation5 + $0x1a0] sm:$0xf]  ;;  %v1030_v28 = vld [vmem:[#allocation5 + $0xa4] sm:$0xf] }
  0x1b   :  { %v1064_v27 = vld [vmem:[#allocation5 + $0x1ac] sm:$0xf0]  ;;  %479 = vmatpush.bf16.msra.mxu0 %v853_v16  ;;  %v837_v29 = vor.u32 %v1032_v24, %v836_v23  ;;  %v838_v30 = vld [vmem:[#allocation5 + $0xb0] sm:$0xf0]  ;;  %v1062_v31 = vld [vmem:[#allocation5 + $0x1a4] sm:$0xf] }
  0x1c   :  { %v966_v32 = vld [vmem:[#allocation5 + $0x1b0] sm:$0xf0]  ;;  %492 = vmatpush.bf16.msra.mxu1 %v981_v17  ;;  %v965_v33 = vor.u32 %v1064_v27, %v964_v26  ;;  %v841_v34 = vor.u32 %v1030_v28, %v838_v30  ;;  %v820_v35 = vld [vmem:[#allocation5 + $0x80] sm:$0xf]  ;;  %v1028_v36 = vld [vmem:[#allocation5 + $0x8c] sm:$0xf0] }
  0x1d   :  { %505 = vmatpush.bf16.msra.mxu2 %v857_v21  ;;  %v948_v37 = vld [vmem:[#allocation5 + $0x180] sm:$0xf]  ;;  %v969_v38 = vor.u32 %v1062_v31, %v966_v32  ;;  %v1060_v39 = vld [vmem:[#allocation5 + $0x18c] sm:$0xf0]  ;;  %v1026_v40 = vld [vmem:[#allocation5 + $0x84] sm:$0xf]  ;;  %v821_v44 = vor.u32 %v1028_v36, %v820_v35 }
  0x1e   :  { %518 = vmatpush.bf16.msra.mxu3 %v985_v25  ;;  %v822_v41 = vld [vmem:[#allocation5 + $0x90] sm:$0xf0]  ;;  %v1058_v42 = vld [vmem:[#allocation5 + $0x184] sm:$0xf]  ;;  %v949_v45 = vor.u32 %v1060_v39, %v948_v37  ;;  %v804_v47 = vld [vmem:[#allocation5 + $0x60] sm:$0xf] }
  0x1f   :  { %v950_v43 = vld [vmem:[#allocation5 + $0x190] sm:$0xf0]  ;;  %480 = vmatpush.bf16.msra.mxu0 %v837_v29  ;;  %v825_v46 = vor.u32 %v1026_v40, %v822_v41  ;;  %v1024_v48 = vld [vmem:[#allocation5 + $0x6c] sm:$0xf0]  ;;  %v932_v49 = vld [vmem:[#allocation5 + $0x160] sm:$0xf] }
  0x20   :  { %493 = vmatpush.bf16.msra.mxu1 %v965_v33  ;;  %v953_v50 = vor.u32 %v1058_v42, %v950_v43  ;;  %v1056_v51 = vld [vmem:[#allocation5 + $0x16c] sm:$0xf0]  ;;  %v1022_v52 = vld [vmem:[#allocation5 + $0x64] sm:$0xf]  ;;  %v806_v53 = vld [vmem:[#allocation5 + $0x70] sm:$0xf0]  ;;  %v805_v56 = vor.u32 %v1024_v48, %v804_v47 }
  0x21   :  { %506 = vmatpush.bf16.msra.mxu2 %v841_v34  ;;  %v1054_v54 = vld [vmem:[#allocation5 + $0x164] sm:$0xf]  ;;  %v934_v55 = vld [vmem:[#allocation5 + $0x170] sm:$0xf0]  ;;  %v933_v57 = vor.u32 %v1056_v51, %v932_v49  ;;  %v809_v58 = vor.u32 %v1022_v52, %v806_v53  ;;  %v788_v59 = vld [vmem:[#allocation5 + $0x40] sm:$0xf] }
  0x22   :  { %519 = vmatpush.bf16.msra.mxu3 %v969_v38  ;;  %v1020_v60 = vld [vmem:[#allocation5 + $0x4c] sm:$0xf0]  ;;  %v916_v61 = vld [vmem:[#allocation5 + $0x140] sm:$0xf]  ;;  %v937_v62 = vor.u32 %v1054_v54, %v934_v55  ;;  %v1018_v0 = vld [vmem:[#allocation5 + $0x44] sm:$0xf] }
  0x23   :  { %481 = vmatpush.bf16.msra.mxu0 %v821_v44  ;;  %v1052_v63 = vld [vmem:[#allocation5 + $0x14c] sm:$0xf0]  ;;  %v790_v1 = vld [vmem:[#allocation5 + $0x50] sm:$0xf0]  ;;  %v1050_v2 = vld [vmem:[#allocation5 + $0x144] sm:$0xf]  ;;  %v789_v4 = vor.u32 %v1020_v60, %v788_v59 }
  0x24   :  { %494 = vmatpush.bf16.msra.mxu1 %v949_v45  ;;  %v918_v3 = vld [vmem:[#allocation5 + $0x150] sm:$0xf0]  ;;  %v917_v5 = vor.u32 %v1052_v63, %v916_v61  ;;  %v793_v6 = vor.u32 %v1018_v0, %v790_v1  ;;  %v772_v7 = vld [vmem:[#allocation5 + $0x20] sm:$0xf]  ;;  %v1016_v8 = vld [vmem:[#allocation5 + $0x2c] sm:$0xf0] }
  0x25   :  { %507 = vmatpush.bf16.msra.mxu2 %v825_v46  ;;  %v900_v9 = vld [vmem:[#allocation5 + $0x120] sm:$0xf]  ;;  %v921_v10 = vor.u32 %v1050_v2, %v918_v3  ;;  %v1048_v11 = vld [vmem:[#allocation5 + $0x12c] sm:$0xf0]  ;;  %v1014_v12 = vld [vmem:[#allocation5 + $0x24] sm:$0xf]  ;;  %v773_v16 = vor.u32 %v1016_v8, %v772_v7 }
  0x26   :  { %520 = vmatpush.bf16.msra.mxu3 %v953_v50  ;;  %v774_v13 = vld [vmem:[#allocation5 + $0x30] sm:$0xf0]  ;;  %v1046_v14 = vld [vmem:[#allocation5 + $0x124] sm:$0xf]  ;;  %v756_v17 = vld [vmem:[#allocation5] sm:$0xf]  ;;  %v901_v19 = vor.u32 %v1048_v11, %v900_v9 }
  0x27   :  { %482 = vmatpush.bf16.msra.mxu0 %v805_v56  ;;  %v902_v15 = vld [vmem:[#allocation5 + $0x130] sm:$0xf0]  ;;  %v1012_v18 = vld [vmem:[#allocation5 + $0xc] sm:$0xf0]  ;;  %v777_v20 = vor.u32 %v1014_v12, %v774_v13  ;;  %v884_v21 = vld [vmem:[#allocation5 + $0x100] sm:$0xf] }
  0x28   :  { %495 = vmatpush.bf16.msra.mxu1 %v933_v57  ;;  %v1044_v22 = vld [vmem:[#allocation5 + $0x10c] sm:$0xf0]  ;;  %v1010_v23 = vld [vmem:[#allocation5 + $0x4] sm:$0xf]  ;;  %v905_v24 = vor.u32 %v1046_v14, %v902_v15  ;;  %v758_v25 = vld [vmem:[#allocation5 + $0x10] sm:$0xf0]  ;;  %v757_v31 = vor.u32 %v1012_v18, %v756_v17 }
  0x29   :  { %508 = vmatpush.bf16.msra.mxu2 %v809_v58  ;;  %v1042_v26 = vld [vmem:[#allocation5 + $0x104] sm:$0xf]  ;;  %v886_v27 = vld [vmem:[#allocation5 + $0x110] sm:$0xf0]  ;;  %v876_v28 = vld [vmem:[#allocation5 + $0xe8] sm:$0xf]  ;;  %v885_v35 = vor.u32 %v1044_v22, %v884_v21  ;;  %v761_v36 = vor.u32 %v1010_v23, %v758_v25 }
  0x2a   :  { %521 = vmatpush.bf16.msra.mxu3 %v937_v62  ;;  %v1041_v29 = vld [vmem:[#allocation5 + $0xf4] sm:$0xf0]  ;;  %v1004_v30 = vld [vmem:[#allocation5 + $0x1e8] sm:$0xf]  ;;  %v1039_v33 = vld [vmem:[#allocation5 + $0xec] sm:$0xf]  ;;  %v889_v40 = vor.u32 %v1042_v26, %v886_v27 }
  0x2b   :  { %483 = vmatpush.bf16.msra.mxu0 %v789_v4  ;;  %v1073_v32 = vld [vmem:[#allocation5 + $0x1f4] sm:$0xf0]  ;;  %v878_v34 = vld [vmem:[#allocation5 + $0xf8] sm:$0xf0]  ;;  %v1071_v37 = vld [vmem:[#allocation5 + $0x1ec] sm:$0xf]  ;;  %v877_v41 = vor.u32 %v1041_v29, %v876_v28 }
  0x2c   :  { %496 = vmatpush.bf16.msra.mxu1 %v917_v5  ;;  %v1006_v38 = vld [vmem:[#allocation5 + $0x1f8] sm:$0xf0]  ;;  %v80_v39 = vld [vmem:[#allocation2] sm:$0xff]  ;;  %v1005_v43 = vor.u32 %v1073_v32, %v1004_v30  ;;  %v881_v44 = vor.u32 %v1039_v33, %v878_v34  ;;  %v860_v45 = vld [vmem:[#allocation5 + $0xc8] sm:$0xf]  ;;  %s1220_s15 = smov [#allocation10]  }
  0x2d   :  { %509 = vmatpush.bf16.msra.mxu2 %v793_v6  ;;  %v81_v42 = vld [vmem:[#allocation2 + $0x8] sm:$0xff]  ;;  %v988_v47 = vld [vmem:[#allocation5 + $0x1c8] sm:$0xf]  ;;  %v1009_v48 = vor.u32 %v1071_v37, %v1006_v38  ;;  %v1035_v50 = vld [vmem:[#allocation5 + $0xcc] sm:$0xf]  ;;  %v1263_v52 = vpack.c.bf16 %v80_v39, %v80_v39  ;;  %s740_s16 = sshll.u32 %s1220_s15, 4  ;;  %s741_s16 = int_to_ptr.vmem [resolvable:$true] %s740_s16 }
  0x2e   :  { %522 = vmatpush.bf16.msra.mxu3 %v921_v10  ;;  %v1037_v46 = vld [vmem:[#allocation5 + $0xd4] sm:$0xf0]  ;;  %v862_v51 = vld [vmem:[#allocation5 + $0xd8] sm:$0xf0]  ;;  %v1067_v53 = vld [vmem:[#allocation5 + $0x1cc] sm:$0xf]  ;;  %v1265_v55 = vpack.c.bf16 %v81_v42, %v81_v42 }
  0x2f   :  { %484 = vmatpush.bf16.msra.mxu0 %v773_v16  ;;  %v1069_v49 = vld [vmem:[#allocation5 + $0x1d4] sm:$0xf0]  ;;  %v990_v54 = vld [vmem:[#allocation5 + $0x1d8] sm:$0xf0]  ;;  %v861_v56 = vor.u32 %v1037_v46, %v860_v45  ;;  %v865_v58 = vor.u32 %v1035_v50, %v862_v51  ;;  %v844_v59 = vld [vmem:[#allocation5 + $0xa8] sm:$0xf] }
  0x30   :  { %497 = vmatpush.bf16.msra.mxu1 %v901_v19  ;;  %v989_v57 = vor.u32 %v1069_v49, %v988_v47  ;;  %v1033_v60 = vld [vmem:[#allocation5 + $0xb4] sm:$0xf0]  ;;  %v972_v61 = vld [vmem:[#allocation5 + $0x1a8] sm:$0xf]  ;;  %v993_v62 = vor.u32 %v1067_v53, %v990_v54  ;;  %v1031_v0 = vld [vmem:[#allocation5 + $0xac] sm:$0xf] }
  0x31   :  { %510 = vmatpush.bf16.msra.mxu2 %v777_v20  ;;  %v1065_v63 = vld [vmem:[#allocation5 + $0x1b4] sm:$0xf0]  ;;  %v846_v1 = vld [vmem:[#allocation5 + $0xb8] sm:$0xf0]  ;;  %v1063_v2 = vld [vmem:[#allocation5 + $0x1ac] sm:$0xf]  ;;  %v845_v4 = vor.u32 %v1033_v60, %v844_v59 }
  0x32   :  { %523 = vmatpush.bf16.msra.mxu3 %v905_v24  ;;  %v974_v3 = vld [vmem:[#allocation5 + $0x1b8] sm:$0xf0]  ;;  %v973_v5 = vor.u32 %v1065_v63, %v972_v61  ;;  %v849_v6 = vor.u32 %v1031_v0, %v846_v1  ;;  %v828_v7 = vld [vmem:[#allocation5 + $0x88] sm:$0xf]  ;;  %v1029_v8 = vld [vmem:[#allocation5 + $0x94] sm:$0xf0] }
  0x33   :  { %485 = vmatpush.bf16.msra.mxu0 %v757_v31  ;;  %v956_v9 = vld [vmem:[#allocation5 + $0x188] sm:$0xf]  ;;  %v977_v10 = vor.u32 %v1063_v2, %v974_v3  ;;  %v1061_v11 = vld [vmem:[#allocation5 + $0x194] sm:$0xf0]  ;;  %v1027_v12 = vld [vmem:[#allocation5 + $0x8c] sm:$0xf]  ;;  %v829_v16 = vor.u32 %v1029_v8, %v828_v7 }
  0x34   :  { %498 = vmatpush.bf16.msra.mxu1 %v885_v35  ;;  %v830_v13 = vld [vmem:[#allocation5 + $0x98] sm:$0xf0]  ;;  %v1059_v14 = vld [vmem:[#allocation5 + $0x18c] sm:$0xf]  ;;  %v957_v17 = vor.u32 %v1061_v11, %v956_v9  ;;  %v812_v19 = vld [vmem:[#allocation5 + $0x68] sm:$0xf] }
  0x35   :  { %511 = vmatpush.bf16.msra.mxu2 %v761_v36  ;;  %v958_v15 = vld [vmem:[#allocation5 + $0x198] sm:$0xf0]  ;;  %v833_v18 = vor.u32 %v1027_v12, %v830_v13  ;;  %v1025_v20 = vld [vmem:[#allocation5 + $0x74] sm:$0xf0]  ;;  %v940_v21 = vld [vmem:[#allocation5 + $0x168] sm:$0xf] }
  0x36   :  { %524 = vmatpush.bf16.msra.mxu3 %v889_v40  ;;  %486 = vmatmul.bf16.vlgmr.msra.gmra.mxu0 %v1263_v52  ;;  %v961_v22 = vor.u32 %v1059_v14, %v958_v15  ;;  %v1057_v23 = vld [vmem:[#allocation5 + $0x174] sm:$0xf0]  ;;  %v1023_v24 = vld [vmem:[#allocation5 + $0x6c] sm:$0xf]  ;;  %v814_v25 = vld [vmem:[#allocation5 + $0x78] sm:$0xf0]  ;;  %v813_v28 = vor.u32 %v1025_v20, %v812_v19 }
  0x37   :  { %530 = vmatpush.bf16.msrb.mxu0 %v877_v41  ;;  %499 = vmatmul.bf16.vlgmr.msra.gmra.mxu1 %v1265_v55  ;;  %v1055_v26 = vld [vmem:[#allocation5 + $0x16c] sm:$0xf]  ;;  %v942_v27 = vld [vmem:[#allocation5 + $0x178] sm:$0xf0]  ;;  %v941_v29 = vor.u32 %v1057_v23, %v940_v21  ;;  %v817_v30 = vor.u32 %v1023_v24, %v814_v25  ;;  %v796_v31 = vld [vmem:[#allocation5 + $0x48] sm:$0xf] }
  0x38   :  { %543 = vmatpush.bf16.msrb.mxu1 %v1005_v43  ;;  %512 = vmatmul.bf16.vlgmr.msra.gmra.mxu2 %v1263_v52  ;;  %v1021_v32 = vld [vmem:[#allocation5 + $0x54] sm:$0xf0]  ;;  %v924_v33 = vld [vmem:[#allocation5 + $0x148] sm:$0xf]  ;;  %v945_v34 = vor.u32 %v1055_v26, %v942_v27  ;;  %v1019_v36 = vld [vmem:[#allocation5 + $0x4c] sm:$0xf] }
  0x39   :  { %556 = vmatpush.bf16.msrb.mxu2 %v881_v44  ;;  %525 = vmatmul.bf16.vlgmr.msra.gmra.mxu3 %v1265_v55  ;;  %v1053_v35 = vld [vmem:[#allocation5 + $0x154] sm:$0xf0]  ;;  %v798_v37 = vld [vmem:[#allocation5 + $0x58] sm:$0xf0]  ;;  %v1051_v38 = vld [vmem:[#allocation5 + $0x14c] sm:$0xf]  ;;  %v797_v40 = vor.u32 %v1021_v32, %v796_v31 }
  0x3a   :  { %569 = vmatpush.bf16.msrb.mxu3 %v1009_v48  ;;  %v926_v39 = vld [vmem:[#allocation5 + $0x158] sm:$0xf0]  ;;  %v925_v41 = vor.u32 %v1053_v35, %v924_v33  ;;  %v801_v42 = vor.u32 %v1019_v36, %v798_v37  ;;  %v780_v43 = vld [vmem:[#allocation5 + $0x28] sm:$0xf]  ;;  %v1017_v44 = vld [vmem:[#allocation5 + $0x34] sm:$0xf0] }
  0x3b   :  { %531 = vmatpush.bf16.msrb.mxu0 %v861_v56  ;;  %v908_v45 = vld [vmem:[#allocation5 + $0x128] sm:$0xf]  ;;  %v929_v46 = vor.u32 %v1051_v38, %v926_v39  ;;  %v1049_v47 = vld [vmem:[#allocation5 + $0x134] sm:$0xf0]  ;;  %v1015_v48 = vld [vmem:[#allocation5 + $0x2c] sm:$0xf]  ;;  %v781_v53 = vor.u32 %v1017_v44, %v780_v43 }
  0x3c   :  { %544 = vmatpush.bf16.msrb.mxu1 %v989_v57  ;;  %v782_v49 = vld [vmem:[#allocation5 + $0x38] sm:$0xf0]  ;;  %v1047_v50 = vld [vmem:[#allocation5 + $0x12c] sm:$0xf]  ;;  %v909_v54 = vor.u32 %v1049_v47, %v908_v45  ;;  %v764_v57 = vld [vmem:[#allocation5 + $0x8] sm:$0xf] }
  0x3d   :  { %557 = vmatpush.bf16.msrb.mxu2 %v865_v58  ;;  %v910_v51 = vld [vmem:[#allocation5 + $0x138] sm:$0xf0]  ;;  %v785_v56 = vor.u32 %v1015_v48, %v782_v49  ;;  %v1013_v58 = vld [vmem:[#allocation5 + $0x14] sm:$0xf0]  ;;  %v892_v59 = vld [vmem:[#allocation5 + $0x108] sm:$0xf] }
  0x3e   :  { %570 = vmatpush.bf16.msrb.mxu3 %v993_v62  ;;  %v913_v60 = vor.u32 %v1047_v50, %v910_v51  ;;  %v1045_v61 = vld [vmem:[#allocation5 + $0x114] sm:$0xf0]  ;;  %v1011_v62 = vld [vmem:[#allocation5 + $0xc] sm:$0xf]  ;;  %v766_v63 = vld [vmem:[#allocation5 + $0x18] sm:$0xf0]  ;;  %v765_v2 = vor.u32 %v1013_v58, %v764_v57 }
  0x3f   :  { %532 = vmatpush.bf16.msrb.mxu0 %v845_v4  ;;  %v1043_v0 = vld [vmem:[#allocation5 + $0x10c] sm:$0xf]  ;;  %v894_v1 = vld [vmem:[#allocation5 + $0x118] sm:$0xf0]  ;;  %v893_v3 = vor.u32 %v1045_v61, %v892_v59  ;;  %v769_v4 = vor.u32 %v1011_v62, %v766_v63  ;;  %v600_v8 = vld [vmem:[#allocation8 + $0x70] sm:$0xff]  ;;  %s742_s19 = sshll.u32 %s1286_s5, 4  ;;  %s743_s19 = int_to_ptr.hbm [resolvable:$true] %s742_s19 }
  0x40   :  { %545 = vmatpush.bf16.msrb.mxu1 %v973_v5  ;;  %v897_v5 = vor.u32 %v1043_v0, %v894_v1  ;;  %v617_v7 = vld [vmem:[#allocation8 + $0xf8] sm:$0xff]  ;;  %v616_v9 = vld [vmem:[#allocation8 + $0xf0] sm:$0xff]  ;;  %v599_v11 = vld [vmem:[#allocation8 + $0x68] sm:$0xff] }
  0x41   :  { %558 = vmatpush.bf16.msrb.mxu2 %v849_v6  ;;  %v601_v6 = vld [vmem:[#allocation8 + $0x78] sm:$0xff]  ;;  %v615_v12 = vld [vmem:[#allocation8 + $0xe8] sm:$0xff]  ;;  %v632_v13 = vld [vmem:[#allocation8 + $0x170] sm:$0xff] }
  0x42   :  { %571 = vmatpush.bf16.msrb.mxu3 %v977_v10  ;;  %v633_v10 = vld [vmem:[#allocation8 + $0x178] sm:$0xff]  ;;  %v598_v14 = vld [vmem:[#allocation8 + $0x60] sm:$0xff]  ;;  %v595_v19 = vld [vmem:[#allocation8 + $0x48] sm:$0xff] }
  0x43   :  { %533 = vmatpush.bf16.msrb.mxu0 %v829_v16  ;;  %v614_v15 = vld [vmem:[#allocation8 + $0xe0] sm:$0xff]  ;;  %v597_v16 = vld [vmem:[#allocation8 + $0x58] sm:$0xff]  ;;  %v631_v23 = vld [vmem:[#allocation8 + $0x168] sm:$0xff] }
  0x44   :  { %546 = vmatpush.bf16.msrb.mxu1 %v957_v17  ;;  %v613_v17 = vld [vmem:[#allocation8 + $0xd8] sm:$0xff]  ;;  %v594_v20 = vld [vmem:[#allocation8 + $0x40] sm:$0xff]  ;;  %v592_v24 = vld [vmem:[#allocation8 + $0x30] sm:$0xff] }
  0x45   :  { %559 = vmatpush.bf16.msrb.mxu2 %v833_v18  ;;  %v596_v18 = vld [vmem:[#allocation8 + $0x50] sm:$0xff]  ;;  %v593_v21 = vld [vmem:[#allocation8 + $0x38] sm:$0xff]  ;;  %v630_v26 = vld [vmem:[#allocation8 + $0x160] sm:$0xff] }
  0x46   :  { %572 = vmatpush.bf16.msrb.mxu3 %v961_v22  ;;  %v610_v22 = vld [vmem:[#allocation8 + $0xc0] sm:$0xff]  ;;  %v609_v25 = vld [vmem:[#allocation8 + $0xb8] sm:$0xff]  ;;  %v648_v31 = vld [vmem:[#allocation8 + $0x1f0] sm:$0xff] }
  0x47   :  { %534 = vmatpush.bf16.msrb.mxu0 %v813_v28  ;;  %v649_v27 = vld [vmem:[#allocation8 + $0x1f8] sm:$0xff]  ;;  %v591_v28 = vld [vmem:[#allocation8 + $0x28] sm:$0xff]  ;;  %v590_v32 = vld [vmem:[#allocation8 + $0x20] sm:$0xff] }
  0x48   :  { %547 = vmatpush.bf16.msrb.mxu1 %v941_v29  ;;  %v608_v29 = vld [vmem:[#allocation8 + $0xb0] sm:$0xff]  ;;  %v607_v33 = vld [vmem:[#allocation8 + $0xa8] sm:$0xff]  ;;  %v589_v36 = vld [vmem:[#allocation8 + $0x18] sm:$0xff] }
  0x49   :  { %560 = vmatpush.bf16.msrb.mxu2 %v817_v30  ;;  %v629_v30 = vld [vmem:[#allocation8 + $0x158] sm:$0xff]  ;;  %v647_v35 = vld [vmem:[#allocation8 + $0x1e8] sm:$0xff]  ;;  %v606_v37 = vld [vmem:[#allocation8 + $0xa0] sm:$0xff] }
  0x4a   :  { %573 = vmatpush.bf16.msrb.mxu3 %v945_v34  ;;  %v628_v34 = vld [vmem:[#allocation8 + $0x150] sm:$0xff]  ;;  %v627_v38 = vld [vmem:[#allocation8 + $0x148] sm:$0xff]  ;;  %v646_v39 = vld [vmem:[#allocation8 + $0x1e0] sm:$0xff] }
  0x4b   :  { %535 = vmatpush.bf16.msrb.mxu0 %v797_v40  ;;  %v588_v40 = vld [vmem:[#allocation8 + $0x10] sm:$0xff]  ;;  %v645_v43 = vld [vmem:[#allocation8 + $0x1d8] sm:$0xff]  ;;  %v587_v44 = vld [vmem:[#allocation8 + $0x8] sm:$0xff] }
  0x4c   :  { %548 = vmatpush.bf16.msrb.mxu1 %v925_v41  ;;  %v605_v41 = vld [vmem:[#allocation8 + $0x98] sm:$0xff]  ;;  %v604_v45 = vld [vmem:[#allocation8 + $0x90] sm:$0xff]  ;;  %v586_v48 = vld [vmem:[#allocation8] sm:$0xff] }
  0x4d   :  { %561 = vmatpush.bf16.msrb.mxu2 %v801_v42  ;;  %v626_v42 = vld [vmem:[#allocation8 + $0x140] sm:$0xff]  ;;  %v644_v47 = vld [vmem:[#allocation8 + $0x1d0] sm:$0xff]  ;;  %v603_v49 = vld [vmem:[#allocation8 + $0x88] sm:$0xff] }
  0x4e   :  { %574 = vmatpush.bf16.msrb.mxu3 %v929_v46  ;;  %v625_v46 = vld [vmem:[#allocation8 + $0x138] sm:$0xff]  ;;  %v624_v50 = vld [vmem:[#allocation8 + $0x130] sm:$0xff]  ;;  %v643_v51 = vld [vmem:[#allocation8 + $0x1c8] sm:$0xff] }
  0x4f   :  { %536 = vmatpush.bf16.msrb.mxu0 %v781_v53  ;;  %v602_v53 = vld [vmem:[#allocation8 + $0x80] sm:$0xff]  ;;  %v641_v58 = vld [vmem:[#allocation8 + $0x1b8] sm:$0xff]  ;;  %v640_v62 = vld [vmem:[#allocation8 + $0x1b0] sm:$0xff] }
  0x50   :  { %549 = vmatpush.bf16.msrb.mxu1 %v909_v54  ;;  %v623_v54 = vld [vmem:[#allocation8 + $0x128] sm:$0xff]  ;;  %v622_v57 = vld [vmem:[#allocation8 + $0x120] sm:$0xff]  ;;  %v148_v59 = vld [vmem:[#allocation7] sm:$0xf] }
  0x51   :  { %562 = vmatpush.bf16.msrb.mxu2 %v785_v56  ;;  %v642_v56 = vld [vmem:[#allocation8 + $0x1c0] sm:$0xff]  ;;  %v621_v61 = vld [vmem:[#allocation8 + $0x118] sm:$0xff]  ;;  %v620_v63 = vld [vmem:[#allocation8 + $0x110] sm:$0xff] }
  0x52   :  { %575 = vmatpush.bf16.msrb.mxu3 %v913_v60  ;;  %v150_v60 = vperm.slane %v148_v59, 0  ;;  %v639_v0 = vld [vmem:[#allocation8 + $0x1a8] sm:$0xff] }
  0x53   :  { %537 = vmatpush.bf16.msrb.mxu0 %v765_v2 }
  0x54   :  { %550 = vmatpush.bf16.msrb.mxu1 %v893_v3 }
  0x55   :  { %563 = vmatpush.bf16.msrb.mxu2 %v769_v4  ;;  %v619_v4 = vld [vmem:[#allocation8 + $0x108] sm:$0xff] }
  0x56   :  { %576 = vmatpush.bf16.msrb.mxu3 %v897_v5  ;;  %538 = vmatmul.bf16.vlgmr.msrb.gmra.mxu0 %v1263_v52  ;;  %v638_v5 = vld [vmem:[#allocation8 + $0x1a0] sm:$0xff] }
  0x57   :  { %654 = vmatpush.msra.mxu0 %v601_v6  ;;  %551 = vmatmul.bf16.vlgmr.msrb.gmra.mxu1 %v1265_v55  ;;  %v151_v6 = vperm.slane %v148_v59, 1 }
  0x58   :  { %674 = vmatpush.msra.mxu1 %v617_v7  ;;  %564 = vmatmul.bf16.vlgmr.msrb.gmra.mxu2 %v1263_v52  ;;  %v612_v52 = vld [vmem:[#allocation8 + $0xd0] sm:$0xff] }
  0x59   :  { %577 = vmatmul.bf16.vlgmr.msrb.gmra.mxu3 %v1265_v55  ;;  %655 = vmatpush.msra.mxu0 %v600_v8  ;;  %v611_v55 = vld [vmem:[#allocation8 + $0xc8] sm:$0xff]  ;;  %v618_v8 = vld [vmem:[#allocation8 + $0x100] sm:$0xff] }
  0x5a   :  { %675 = vmatpush.msra.mxu1 %v616_v9  ;;  %694 = vmatpush.msra.mxu2 %v633_v10  ;;  %v637_v9 = vld [vmem:[#allocation8 + $0x198] sm:$0xff] }
  0x5b   :  { %656 = vmatpush.msra.mxu0 %v599_v11  ;;  %714 = vmatpush.msra.mxu3 %v649_v27 }
  0x5c   :  { %676 = vmatpush.msra.mxu1 %v615_v12  ;;  %695 = vmatpush.msra.mxu2 %v632_v13  ;;  %v636_v12 = vld [vmem:[#allocation8 + $0x190] sm:$0xff] }
  0x5d   :  { %657 = vmatpush.msra.mxu0 %v598_v14  ;;  %715 = vmatpush.msra.mxu3 %v648_v31 }
  0x5e   :  { %677 = vmatpush.msra.mxu1 %v614_v15  ;;  %696 = vmatpush.msra.mxu2 %v631_v23  ;;  %v635_v15 = vld [vmem:[#allocation8 + $0x188] sm:$0xff] }
  0x5f   :  { %658 = vmatpush.msra.mxu0 %v597_v16  ;;  %716 = vmatpush.msra.mxu3 %v647_v35 }
  0x60   :  { %678 = vmatpush.msra.mxu1 %v613_v17  ;;  %697 = vmatpush.msra.mxu2 %v630_v26  ;;  %v153_v26 = vperm.slane %v148_v59, 3 }
  0x61   :  { %659 = vmatpush.msra.mxu0 %v596_v18  ;;  %717 = vmatpush.msra.mxu3 %v646_v39  ;;  %v634_v18 = vld [vmem:[#allocation8 + $0x180] sm:$0xff] }
  0x62   :  { %679 = vmatpush.msra.mxu1 %v612_v52  ;;  %698 = vmatpush.msra.mxu2 %v629_v30 }
  0x63   :  { %660 = vmatpush.msra.mxu0 %v595_v19  ;;  %718 = vmatpush.msra.mxu3 %v645_v43 }
  0x64   :  { %680 = vmatpush.msra.mxu1 %v611_v55  ;;  %699 = vmatpush.msra.mxu2 %v628_v34 }
  0x65   :  { %661 = vmatpush.msra.mxu0 %v594_v20  ;;  %719 = vmatpush.msra.mxu3 %v644_v47 }
  0x66   :  { %681 = vmatpush.msra.mxu1 %v610_v22  ;;  %700 = vmatpush.msra.mxu2 %v627_v38 }
  0x67   :  { %662 = vmatpush.msra.mxu0 %v593_v21  ;;  %720 = vmatpush.msra.mxu3 %v643_v51  ;;  %v152_v21 = vperm.slane %v148_v59, 2 }
  0x68   :  { %682 = vmatpush.msra.mxu1 %v609_v25  ;;  %701 = vmatpush.msra.mxu2 %v626_v42 }
  0x69   :  { %663 = vmatpush.msra.mxu0 %v592_v24  ;;  %721 = vmatpush.msra.mxu3 %v642_v56 }
  0x6a   :  { %683 = vmatpush.msra.mxu1 %v608_v29  ;;  %702 = vmatpush.msra.mxu2 %v625_v46 }
  0x6b   :  { %664 = vmatpush.msra.mxu0 %v591_v28  ;;  %722 = vmatpush.msra.mxu3 %v641_v58 }
  0x6c   :  { %684 = vmatpush.msra.mxu1 %v607_v33  ;;  %703 = vmatpush.msra.mxu2 %v624_v50 }
  0x6d   :  { %665 = vmatpush.msra.mxu0 %v590_v32  ;;  %723 = vmatpush.msra.mxu3 %v640_v62 }
  0x6e   :  { %685 = vmatpush.msra.mxu1 %v606_v37  ;;  %704 = vmatpush.msra.mxu2 %v623_v54  ;;  %v1083_v37 = vld [vmem:[%s1285_s4] ss:$0 sm:$0xff] }
  0x6f   :  { %666 = vmatpush.msra.mxu0 %v589_v36  ;;  %724 = vmatpush.msra.mxu3 %v639_v0 }
  0x70   :  { %686 = vmatpush.msra.mxu1 %v605_v41  ;;  %705 = vmatpush.msra.mxu2 %v622_v57 }
  0x71   :  { %667 = vmatpush.msra.mxu0 %v588_v40  ;;  %725 = vmatpush.msra.mxu3 %v638_v5 }
  0x72   :  { %687 = vmatpush.msra.mxu1 %v604_v45  ;;  %706 = vmatpush.msra.mxu2 %v621_v61 }
  0x73   :  { %668 = vmatpush.msra.mxu0 %v587_v44  ;;  %726 = vmatpush.msra.mxu3 %v637_v9 }
  0x74   :  { %688 = vmatpush.msra.mxu1 %v603_v49  ;;  %707 = vmatpush.msra.mxu2 %v620_v63 }
  0x75   :  { %669 = vmatpush.msra.mxu0 %v586_v48  ;;  %727 = vmatpush.msra.mxu3 %v636_v12 }
  0x76   :  { %689 = vmatpush.msra.mxu1 %v602_v53  ;;  %708 = vmatpush.msra.mxu2 %v619_v4 }
  0x77   :  { %728 = vmatpush.msra.mxu3 %v635_v15 }
  0x78   :  { %709 = vmatpush.msra.mxu2 %v618_v8 }
  0x79   :  { %729 = vmatpush.msra.mxu3 %v634_v18 }
  0xb3   :  { %v487_v1 = vpop.f32.mrf.mxu0 }
  0xb4   :  { %v488_v2 = vadd.f32 %v487_v1, %v150_v60  ;;  %v500_v3 = vpop.f32.mrf.mxu1 }
  0xb6   :  { %v501_v7 = vadd.f32 %v500_v3, %v488_v2 }
  0xb8   :  { %v582_v10 = vmax.f32 %v501_v7, 0.0 }
  0xba   :  { %670 = vmatmul.f32.vlgmr.msra.gmra.mxu0 %v582_v10 }
  0xbb   :  { %v513_v11 = vpop.f32.mrf.mxu2  ;;  %v489_v17 = vpop.f32.mrf.mxu0 }
  0xbc   :  { %v514_v13 = vadd.f32 %v513_v11, %v151_v6  ;;  %v526_v14 = vpop.f32.mrf.mxu3  ;;  %v502_v52 = vpop.f32.mrf.mxu1 }
  0xbe   :  { %v527_v16 = vadd.f32 %v526_v14, %v514_v13 }
  0xc0   :  { %v583_v19 = vmax.f32 %v527_v16, 0.0 }
  0xc2   :  { %690 = vmatmul.f32.vlgmr.msra.gmra.mxu1 %v583_v19 }
  0xc3   :  { %v515_v55 = vpop.f32.mrf.mxu2 }
  0xc4   :  { %v528_v20 = vpop.f32.mrf.mxu3 }
  0xd3   :  { %v539_v22 = vpop.f32.mrf.mxu0 }
  0xd4   :  { %v540_v23 = vadd.f32 %v539_v22, %v152_v21  ;;  %v552_v24 = vpop.f32.mrf.mxu1 }
  0xd6   :  { %v553_v25 = vadd.f32 %v552_v24, %v540_v23 }
  0xd8   :  { %v584_v27 = vmax.f32 %v553_v25, 0.0 }
  0xda   :  { %710 = vmatmul.f32.vlgmr.msra.gmra.mxu2 %v584_v27 }
  0xdb   :  { %v565_v28 = vpop.f32.mrf.mxu2  ;;  %v541_v31 = vpop.f32.mrf.mxu0 }
  0xdc   :  { %v566_v29 = vadd.f32 %v565_v28, %v153_v26  ;;  %v578_v30 = vpop.f32.mrf.mxu3  ;;  %v554_v32 = vpop.f32.mrf.mxu1 }
  0xde   :  { %v579_v33 = vadd.f32 %v578_v30, %v566_v29 }
  0xe0   :  { %v585_v34 = vmax.f32 %v579_v33, 0.0 }
  0xe2   :  { %730 = vmatmul.f32.vlgmr.msra.gmra.mxu3 %v585_v34 }
  0xe3   :  { %v567_v35 = vpop.f32.mrf.mxu2 }
  0xe4   :  { %v580_v36 = vpop.f32.mrf.mxu3 }
 0x137   :  { %v671_v38 = vpop.f32.mrf.mxu0 }
 0x138   :  { %v672_v39 = vadd.f32 %v1083_v37, %v671_v38 }
 0x13f   :  { %v691_v40 = vpop.f32.mrf.mxu1 }
 0x140   :  { %v692_v42 = vadd.f32 %v691_v40, %v672_v39 }
 0x15d   :  { %v711_v41 = vpop.f32.mrf.mxu2 }
 0x15e   :  { %v712_v43 = vadd.f32 %v711_v41, %v692_v42 }
 0x165   :  { %v731_v44 = vpop.f32.mrf.mxu3 }
 0x166   :  { %v732_v45 = vadd.f32 %v731_v44, %v712_v43 }
 0x168   :  { %734 = vst [vmem:[#allocation10] sm:$0xff] %v732_v45 }
 0x169   :  { %745 = dma.vmem_to_hbm [thread:$0]  %s741_s16, 128, %s743_s19, [#allocation4]  }
 0x16a   :  { %1210 = dma.done.wait [#allocation4], 128  }
 0x16b   :  { %1211 = vsyncadd [#allocation4], 4294967168 }
 0x16c   :  { %750 = vsyncpa [#allocation3], 1 }
 0x16d   :  { %751 = vsyncpa [#allocation6], 1 }
 0x16e   :  { %752 = vsyncpa [#allocation9], 1 }
 0x16f   :  { %753 = vsyncpa [#allocation4], 1 }

</bundles_post_ra>
